<compile_context>
chip_gen: v7x
topology: tpu7x:2x2x1
jax: 0.10.0
libtpu: 0.0.40
codegen_flags: <defaults>
</compile_context>

<pallas_src>
import math
import functools

import jax
import jax.numpy as jnp
from jax.experimental import pallas as pl
from jax.experimental.pallas import tpu as pltpu


def _round_up(x, m):
    return ((x + m - 1) // m) * m


def _pick_t_ff(dff_pad, t_ff_req):
    """Largest multiple of 128 that divides dff_pad and is <= t_ff_req."""
    t_ff_req = max(128, min(t_ff_req, dff_pad))
    t_ff_req -= t_ff_req % 128
    for cand in range(t_ff_req, 127, -128):
        if dff_pad % cand == 0:
            return cand
    return 128  # always divides (dff_pad is a multiple of 128)


def _pick_tm(M, tm_req):
    """Row-tile size: clamp to the (sublane-rounded) row count; ensure >= 2
    parallel row tiles when there is enough work (dual-TensorCore v7x)."""
    tm = min(tm_req, max(_round_up(M, 8), 8))
    if M >= 512 and pl.cdiv(M, tm) < 2:
        tm = _round_up(pl.cdiv(M, 2), 8)
    return tm


# --------------------------------------------------------------------------- #
# Kernel
# --------------------------------------------------------------------------- #
def _ffn_kernel(x_ref, w1_ref, b1_ref, w2_ref, b2_ref, o_ref, acc_ref, *, t_ff):
    # x_ref:  (tm, dm_pad)      original dtype; block index constant across k
    # w1_ref: (dm_pad, t_ff)    bf16, contiguous pre-blocked slab k
    # b1_ref: (1, dff_pad)      f32, resident (constant index_map)
    # w2_ref: (t_ff, dm_pad)    bf16, contiguous row slab k
    # b2_ref: (1, dm_pad)       f32, resident
    # o_ref:  (tm, dm_pad)      acc_ref: (tm, dm_pad) f32 scratch
    k = pl.program_id(1)

    @pl.when(k == 0)
    def _():
        acc_ref[...] = jnp.zeros_like(acc_ref)

    # First matmul on the MXU: cast x in-register (no wrapper pad/cast pass).
    x_blk = x_ref[...].astype(w1_ref.dtype)
    h = jnp.dot(x_blk, w1_ref[...], preferred_element_type=jnp.float32)

    # Bias slab sliced from the resident full-row b1 (no per-step DMA).
    b1_slab = b1_ref[:, pl.ds(pl.multiple_of(k * t_ff, 128), t_ff)]
    h = jnp.maximum(h + b1_slab, 0.0)
    # TODO(synk): dropout omitted (identity / eval mode); training semantics
    # would mask `h` with pltpu.prng_seed + pltpu.prng_random_bits.

    # Second matmul: accumulate this d_ff slice's partial product in f32.
    acc_ref[...] += jnp.dot(h.astype(w2_ref.dtype), w2_ref[...],
                            preferred_element_type=jnp.float32)

    @pl.when(k == pl.num_programs(1) - 1)
    def _():
        # b2 is added exactly once, on the final reduction step.
        o_ref[...] = (acc_ref[...] + b2_ref[...]).astype(o_ref.dtype)


# --------------------------------------------------------------------------- #
# One-time parameter preparation (hoisted out of the per-call path)
# --------------------------------------------------------------------------- #
def prepare_ffn_params(w1, b1, w2, b2, *, t_ff=1024, compute_dtype=jnp.bfloat16):
    """Cast / pad / pre-block the FFN weights exactly once.

    Returns (w1_blocked, b1_pad, w2_pad, b2_pad, d_model) where
      w1_blocked: (n_k, dm_pad, t_ff) compute_dtype  -- contiguous k-slabs
      b1_pad:     (1, dff_pad) f32
      w2_pad:     (dff_pad, dm_pad) compute_dtype
      b2_pad:     (1, dm_pad) f32
    """
    d_model, d_ff = w1.shape
    dm_pad = _round_up(d_model, 128)
    dff_pad = _round_up(d_ff, 128)
    t_ff = _pick_t_ff(dff_pad, t_ff)
    n_k = dff_pad // t_ff

    w1p = jnp.pad(w1.astype(compute_dtype),
                  ((0, dm_pad - d_model), (0, dff_pad - d_ff)))
    # Pre-block so slab k == W1[:, k*t_ff:(k+1)*t_ff] is contiguous in HBM.
    w1b = w1p.reshape(dm_pad, n_k, t_ff).transpose(1, 0, 2)

    b1p = jnp.pad(b1.astype(jnp.float32), (0, dff_pad - d_ff)).reshape(1, dff_pad)
    w2p = jnp.pad(w2.astype(compute_dtype),
                  ((0, dff_pad - d_ff), (0, dm_pad - d_model)))
    b2p = jnp.pad(b2.astype(jnp.float32), (0, dm_pad - d_model)).reshape(1, dm_pad)

    return (jax.block_until_ready(w1b), b1p, w2p, b2p, d_model)


# --------------------------------------------------------------------------- #
# Per-call wrapper (no weight passes; x read directly when 128-aligned)
# --------------------------------------------------------------------------- #
@functools.partial(jax.jit,
                   static_argnames=("d_model", "tm", "vmem_limit_bytes"))
def _ffn_call(x, w1b, b1p, w2p, b2p, *, d_model, tm, vmem_limit_bytes):
    B, S, _ = x.shape
    M = B * S
    n_k, dm_pad, t_ff = w1b.shape
    out_dtype = x.dtype

    x2 = x.reshape(M, d_model)
    if dm_pad != d_model:
        # Rare path (d_model not 128-aligned): pad feature columns only.
        x2 = jnp.pad(x2, ((0, 0), (0, dm_pad - d_model)))

    tm = _pick_tm(M, tm)
    grid = (pl.cdiv(M, tm), n_k)          # (row tiles, d_ff reduction)
    dff_pad = b1p.shape[1]

    out = pl.pallas_call(
        functools.partial(_ffn_kernel, t_ff=t_ff),
        out_shape=jax.ShapeDtypeStruct((M, dm_pad), out_dtype),
        grid_spec=pltpu.PrefetchScalarGridSpec(
            num_scalar_prefetch=0,
            grid=grid,
            in_specs=[
                pl.BlockSpec((tm, dm_pad), lambda i, k: (i, 0)),          # x rows
                pl.BlockSpec((None, dm_pad, t_ff), lambda i, k: (k, 0, 0)),  # W1 slab
                pl.BlockSpec((1, dff_pad), lambda i, k: (0, 0)),          # b1 resident
                pl.BlockSpec((t_ff, dm_pad), lambda i, k: (k, 0)),        # W2 slab
                pl.BlockSpec((1, dm_pad), lambda i, k: (0, 0)),           # b2 resident
            ],
            out_specs=pl.BlockSpec((tm, dm_pad), lambda i, k: (i, 0)),
            scratch_shapes=[pltpu.VMEM((tm, dm_pad), jnp.float32)],
        ),
        compiler_params=pltpu.CompilerParams(
            dimension_semantics=("parallel", "arbitrary"),
            vmem_limit_bytes=vmem_limit_bytes,
        ),
    )(x2, w1b, b1p, w2p, b2p)

    return out[:, :d_model].reshape(B, S, d_model)


def position_wise_ffn(x, params, *, tm=512, vmem_limit_bytes=48 * 1024 * 1024):
    """x: (B, S, d_model); params from prepare_ffn_params."""
    w1b, b1p, w2p, b2p, d_model = params
    return _ffn_call(x, w1b, b1p, w2p, b2p, d_model=d_model, tm=tm,
                     vmem_limit_bytes=vmem_limit_bytes)


# --------------------------------------------------------------------------- #
# Init matching the PyTorch module
# --------------------------------------------------------------------------- #
def init_ffn_params(key, d_model, d_ff, dtype=jnp.float32):
    """Kaiming-uniform(a=sqrt(5)) init, matching nn.Linear's default scheme:
    weight ~ U(-1/sqrt(fan_in), 1/sqrt(fan_in)); bias uses the same bound."""
    k1, k2, k3, k4 = jax.random.split(key, 4)
    bound1 = 1.0 / math.sqrt(d_model)
    w1 = jax.random.uniform(k1, (d_model, d_ff), dtype, -bound1, bound1)
    b1 = jax.random.uniform(k2, (d_ff,), dtype, -bound1, bound1)
    bound2 = 1.0 / math.sqrt(d_ff)
    w2 = jax.random.uniform(k3, (d_ff, d_model), dtype, -bound2, bound2)
    b2 = jax.random.uniform(k4, (d_model,), dtype, -bound2, bound2)
    return w1, b1, w2, b2


if __name__ == "__main__":
    key = jax.random.PRNGKey(0)
    # Small but lane-aligned sizes (d_model / d_ff multiples of 128).
    B, S, d_model, d_ff = 2, 8, 256, 512

    kx, kp = jax.random.split(key)
    x = jax.random.normal(kx, (B, S, d_model), jnp.float32)
    w1, b1, w2, b2 = init_ffn_params(kp, d_model, d_ff)

    # One-time weight preparation (cast/pad/pre-block) -- NOT per call.
    params = prepare_ffn_params(w1, b1, w2, b2)

    out = position_wise_ffn(x, params)
    out = jax.block_until_ready(out)

    # Reference in plain f32 JAX (dropout is identity at inference). The
    # kernel runs the matmuls in bf16 with f32 accumulation, hence the
    # modest tolerance.
    ref = jnp.maximum(x @ w1 + b1, 0.0) @ w2 + b2
    assert out.shape == (B, S, d_model)
    assert out.dtype == x.dtype
    max_err = float(jnp.max(jnp.abs(out - ref)))
    assert jnp.allclose(out, ref, atol=5e-2, rtol=5e-2), f"max abs err {max_err}"

    print("KERNEL_OK")
</pallas_src>

<mosaic_0001>
module attributes {stable_mosaic.version = 11 : i64} {
  func.func @_ffn_kernel(%arg0: i32, %arg1: i32, %arg2: memref<16x256xf32, #tpu.memory_space<vmem>>, %arg3: memref<1x256x512xbf16, #tpu.memory_space<vmem>>, %arg4: memref<1x512xf32, #tpu.memory_space<vmem>>, %arg5: memref<512x256xbf16, #tpu.memory_space<vmem>>, %arg6: memref<1x256xf32, #tpu.memory_space<vmem>>, %arg7: memref<16x256xf32, #tpu.memory_space<vmem>>, %arg8: memref<16x256xf32, #tpu.memory_space<vmem>>) attributes {dimension_semantics = [#tpu.dimension_semantics<parallel>, #tpu.dimension_semantics<arbitrary>], iteration_bounds = array<i64: 1, 1>, scalar_prefetch = 0 : i64, scratch_operands = 1 : i64, tpu.core_type = #tpu.core_type<tc>, window_params = [{transform_indices = @transform_0, window_bounds = array<i64: 16, 256>}, {transform_indices = @transform_1, window_bounds = array<i64: 1, 256, 512>}, {pipeline_mode = #tpu.pipeline_mode<synchronous>, transform_indices = @transform_2, window_bounds = array<i64: 1, 512>}, {transform_indices = @transform_3, window_bounds = array<i64: 512, 256>}, {pipeline_mode = #tpu.pipeline_mode<synchronous>, transform_indices = @transform_4, window_bounds = array<i64: 1, 256>}, {transform_indices = @transform_5, window_bounds = array<i64: 16, 256>}]} {
    %c0_i32 = arith.constant 0 : i32
    %0 = arith.cmpi eq, %arg1, %c0_i32 : i32
    %1 = arith.extui %0 : i1 to i32
    %c0_i32_0 = arith.constant 0 : i32
    %2 = arith.cmpi ne, %1, %c0_i32_0 : i32
    scf.if %2 {
      %cst_16 = arith.constant 0.000000e+00 : f32
      %25 = vector.broadcast %cst_16 : f32 to vector<16x256xf32>
      %c0_17 = arith.constant 0 : index
      %c0_18 = arith.constant 0 : index
      %26 = vector.load %arg8[%c0_17, %c0_18] : memref<16x256xf32, #tpu.memory_space<vmem>>, vector<16x256xf32>
      tpu.vector_store %arg8[%c0_17, %c0_18], %25 {strides = array<i32>} : memref<16x256xf32, #tpu.memory_space<vmem>>, vector<16x256xf32>,
    } else {
    }
    %c0 = arith.constant 0 : index
    %c0_1 = arith.constant 0 : index
    %3 = vector.load %arg2[%c0, %c0_1] : memref<16x256xf32, #tpu.memory_space<vmem>>, vector<16x256xf32>
    %4 = arith.truncf %3 : vector<16x256xf32> to vector<16x256xbf16>
    %c0_2 = arith.constant 0 : index
    %c0_3 = arith.constant 0 : index
    %c0_4 = arith.constant 0 : index
    %5 = vector.load %arg3[%c0_2, %c0_3, %c0_4] : memref<1x256x512xbf16, #tpu.memory_space<vmem>>, vector<1x256x512xbf16>
    %6 = vector.shape_cast %5 : vector<1x256x512xbf16> to vector<256x512xbf16>
    %cst = arith.constant dense<0.000000e+00> : vector<16x512xf32>
    %7 = tpu.matmul %4, %6, %cst {dimension_numbers = #tpu.dot_dimension_numbers<[1], [0], [0], [1], [0, 0, 1, 1], [], []>} : vector<16x256xbf16>, vector<256x512xbf16>, vector<16x512xf32> -> vector<16x512xf32>
    %c512_i32 = arith.constant 512 : i32
    %8 = arith.muli %arg1, %c512_i32 : i32
    %9 = tpu.assume_multiple %8, 128 : i32
    %c0_5 = arith.constant 0 : index
    %10 = arith.index_cast %9 : i32 to index
    %11 = vector.load %arg4[%c0_5, %10] : memref<1x512xf32, #tpu.memory_space<vmem>>, vector<1x512xf32>
    %12 = vector.broadcast %11 : vector<1x512xf32> to vector<16x512xf32>
    %13 = arith.addf %7, %12 : vector<16x512xf32>
    %cst_6 = arith.constant 0.000000e+00 : f32
    %14 = vector.broadcast %cst_6 : f32 to vector<16x512xf32>
    %15 = arith.maximumf %13, %14 : vector<16x512xf32>
    %c0_7 = arith.constant 0 : index
    %c0_8 = arith.constant 0 : index
    %16 = vector.load %arg8[%c0_7, %c0_8] : memref<16x256xf32, #tpu.memory_space<vmem>>, vector<16x256xf32>
    %17 = arith.truncf %15 : vector<16x512xf32> to vector<16x512xbf16>
    %c0_9 = arith.constant 0 : index
    %c0_10 = arith.constant 0 : index
    %18 = vector.load %arg5[%c0_9, %c0_10] : memref<512x256xbf16, #tpu.memory_space<vmem>>, vector<512x256xbf16>
    %cst_11 = arith.constant dense<0.000000e+00> : vector<16x256xf32>
    %19 = tpu.matmul %17, %18, %cst_11 {dimension_numbers = #tpu.dot_dimension_numbers<[1], [0], [0], [1], [0, 0, 1, 1], [], []>} : vector<16x512xbf16>, vector<512x256xbf16>, vector<16x256xf32> -> vector<16x256xf32>
    %20 = arith.addf %16, %19 : vector<16x256xf32>
    %c0_12 = arith.constant 0 : index
    %c0_13 = arith.constant 0 : index
    %21 = vector.load %arg8[%c0_12, %c0_13] : memref<16x256xf32, #tpu.memory_space<vmem>>, vector<16x256xf32>
    tpu.vector_store %arg8[%c0_12, %c0_13], %20 {strides = array<i32>} : memref<16x256xf32, #tpu.memory_space<vmem>>, vector<16x256xf32>,
    %c0_i32_14 = arith.constant 0 : i32
    %22 = arith.cmpi eq, %arg1, %c0_i32_14 : i32
    %23 = arith.extui %22 : i1 to i32
    %c0_i32_15 = arith.constant 0 : i32
    %24 = arith.cmpi ne, %23, %c0_i32_15 : i32
    scf.if %24 {
      %c0_16 = arith.constant 0 : index
      %c0_17 = arith.constant 0 : index
      %25 = vector.load %arg8[%c0_16, %c0_17] : memref<16x256xf32, #tpu.memory_space<vmem>>, vector<16x256xf32>
      %c0_18 = arith.constant 0 : index
      %c0_19 = arith.constant 0 : index
      %26 = vector.load %arg6[%c0_18, %c0_19] : memref<1x256xf32, #tpu.memory_space<vmem>>, vector<1x256xf32>
      %27 = vector.broadcast %26 : vector<1x256xf32> to vector<16x256xf32>
      %28 = arith.addf %25, %27 : vector<16x256xf32>
      %c0_20 = arith.constant 0 : index
      %c0_21 = arith.constant 0 : index
      %29 = vector.load %arg7[%c0_20, %c0_21] : memref<16x256xf32, #tpu.memory_space<vmem>>, vector<16x256xf32>
      tpu.vector_store %arg7[%c0_20, %c0_21], %28 {strides = array<i32>} : memref<16x256xf32, #tpu.memory_space<vmem>>, vector<16x256xf32>,
    } else {
    }
    return
  }
  func.func @transform_0(%arg0: i32, %arg1: i32) -> (i32, i32) {
    %c0_i32 = arith.constant 0 : i32
    %c0_i32_0 = arith.constant 0 : i32
    return %arg0, %c0_i32 : i32, i32
  }
  func.func @transform_1(%arg0: i32, %arg1: i32) -> (i32, i32, i32) {
    %c0_i32 = arith.constant 0 : i32
    %c0_i32_0 = arith.constant 0 : i32
    %c0_i32_1 = arith.constant 0 : i32
    return %arg1, %c0_i32, %c0_i32_0 : i32, i32, i32
  }
  func.func @transform_2(%arg0: i32, %arg1: i32) -> (i32, i32) {
    %c0_i32 = arith.constant 0 : i32
    %c0_i32_0 = arith.constant 0 : i32
    %c0_i32_1 = arith.constant 0 : i32
    return %c0_i32, %c0_i32_0 : i32, i32
  }
  func.func @transform_3(%arg0: i32, %arg1: i32) -> (i32, i32) {
    %c0_i32 = arith.constant 0 : i32
    %c0_i32_0 = arith.constant 0 : i32
    return %arg1, %c0_i32 : i32, i32
  }
  func.func @transform_4(%arg0: i32, %arg1: i32) -> (i32, i32) {
    %c0_i32 = arith.constant 0 : i32
    %c0_i32_0 = arith.constant 0 : i32
    %c0_i32_1 = arith.constant 0 : i32
    return %c0_i32, %c0_i32_0 : i32, i32
  }
  func.func @transform_5(%arg0: i32, %arg1: i32) -> (i32, i32) {
    %c0_i32 = arith.constant 0 : i32
    %c0_i32_0 = arith.constant 0 : i32
    return %arg0, %c0_i32 : i32, i32
  }
}

</mosaic_0001>

<bundles_post_ra>
// kernel: _ffn_call.1
= control target key start
LH: loop header
LB: loop body
LE: loop exit
PB: predicated region body
PF: predicated region fallthrough
CT: control target
= control target key end

     0   :  { %10 = vsyncpa [#allocation4], 0  ;;  %s1674_s0 = inlined_call_operand.hbm [shape: f32[16,256], index: 0, kind: input, shape index: {}]   ;;  %s1675_s1 = inlined_call_operand.hbm [shape: bf16[1,256,512], index: 1, kind: input, shape index: {}]   ;;  %s1676_s2 = inlined_call_operand.vmem [shape: f32[1,512], index: 2, kind: input, shape index: {}]   ;;  %s1677_s3 = inlined_call_operand.hbm [shape: bf16[512,256], index: 3, kind: input, shape index: {}]   ;;  %s1678_s4 = inlined_call_operand.vmem [shape: f32[1,256], index: 4, kind: input, shape index: {}]   ;;  %s1679_s5 = inlined_call_operand.hbm [shape: f32[16,256], index: 5, kind: output, shape index: {}]  }
   0x1   :  { %11 = vsyncpa [#allocation7], 0 }
   0x2   :  { %12 = vsyncpa [#allocation5], 0  ;;  %s1538_s18 = smov [#allocation6]   ;;  %s1539_s20 = smov [#allocation3]  }
   0x3   :  { %s30_s19 = sshll.u32 %s1538_s18, 4  ;;  %s18_s21 = sshll.u32 %s1539_s20, 4  ;;  %s31_s19 = int_to_ptr.vmem [resolvable:$true] %s30_s19  ;;  %s1576_s21 = int_to_ptr.vmem [resolvable:$true] %s18_s21 }
   0x4   :  { %s1444_s24 = scalar_lea.hbm %s1675_s1, 8192 }
   0x5   :  { %p1445_p0 = scmp.ne.s32.totalorder %s1675_s1, %s1444_s24  ;;  %p1448_p1 = scmp.lt.u32.totalorder %s1444_s24, %s1675_s1 }
   0x7   :  { %p1450_p2 = pnand %p1448_p1, %p1445_p0 }
   0x9   :  { %1453 = shalt.err (!%p1450_p2)
}
   0xa   :  { %s1454_s29 = scalar_lea.vmem %s31_s19, 8192  ;;  %p1459_p4 = scmp.lt.s32.totalorder %s31_s19, %s31_s19 }
   0xb   :  { %p1455_p3 = scmp.ne.s32.totalorder %s31_s19, %s1454_s29  ;;  %p1460_p5 = scmp.lt.s32.totalorder %s1454_s29, %s1454_s29 }
   0xd   :  { %p1461_p6 = por %p1460_p5, %p1459_p4 }
   0xf   :  { %p1462_p7 = pnand %p1461_p6, %p1455_p3 }
  0x11   :  { %1465 = shalt.err (!%p1462_p7)
}
  0x12   :  { %s1540_s30 = smov 256   ;;  %s1541_s6 = smov 16  }
  0x13   :  { %36 = dma.hbm_to_vmem [thread:$0]  %s1675_s1, 8192, %s31_s19, [#allocation7], %s1540_s30, %s1540_s30, %s1541_s6  }
  0x14   :  { %s1466_s11 = scalar_lea.hbm %s1674_s0, 512 }
  0x15   :  { %p1467_p8 = scmp.ne.s32.totalorder %s1674_s0, %s1466_s11  ;;  %p1470_p9 = scmp.lt.u32.totalorder %s1466_s11, %s1674_s0 }
  0x17   :  { %p1472_p10 = pnand %p1470_p9, %p1467_p8 }
  0x19   :  { %1475 = shalt.err (!%p1472_p10)
}
  0x1a   :  { %s1476_s16 = scalar_lea.vmem %s1576_s21, 512  ;;  %p1481_p12 = scmp.lt.s32.totalorder %s1576_s21, %s1576_s21 }
  0x1b   :  { %p1477_p11 = scmp.ne.s32.totalorder %s1576_s21, %s1476_s16  ;;  %p1482_p13 = scmp.lt.s32.totalorder %s1476_s16, %s1476_s16 }
  0x1d   :  { %p1483_p0 = por %p1482_p13, %p1481_p12 }
  0x1f   :  { %p1484_p1 = pnand %p1483_p0, %p1477_p11 }
  0x21   :  { %1487 = shalt.err (!%p1484_p1)
}
  0x22   :  { %24 = dma.hbm_to_vmem [thread:$0]  %s1674_s0, 512, %s1576_s21, [#allocation4], %s1540_s30, %s1540_s30, %s1541_s6  }
  0x23   :  { %s1542_s18 = smov [#allocation8]   ;;  %s1488_s23 = scalar_lea.hbm %s1677_s3, 8192 }
  0x24   :  { %s44_s19 = sshll.u32 %s1542_s18, 4  ;;  %p1489_p2 = scmp.ne.s32.totalorder %s1677_s3, %s1488_s23  ;;  %s45_s19 = int_to_ptr.vmem [resolvable:$true] %s44_s19 }
  0x25   :  { %p1492_p3 = scmp.lt.u32.totalorder %s1488_s23, %s1677_s3 }
  0x27   :  { %p1494_p4 = pnand %p1492_p3, %p1489_p2 }
  0x29   :  { %1497 = shalt.err (!%p1494_p4)
}
  0x2a   :  { %s1498_s28 = scalar_lea.vmem %s45_s19, 8192  ;;  %p1503_p6 = scmp.lt.s32.totalorder %s45_s19, %s45_s19 }
  0x2b   :  { %p1499_p5 = scmp.ne.s32.totalorder %s45_s19, %s1498_s28  ;;  %p1504_p7 = scmp.lt.s32.totalorder %s1498_s28, %s1498_s28 }
  0x2d   :  { %p1505_p8 = por %p1504_p7, %p1503_p6 }
  0x2f   :  { %p1506_p9 = pnand %p1505_p8, %p1499_p5 }
  0x31   :  { %1509 = shalt.err (!%p1506_p9)
}
  0x32   :  { %s1543_s0 = smov 128   ;;  %s1544_s21 = smov 8  }
  0x33   :  { %50 = dma.hbm_to_vmem [thread:$0]  %s1677_s3, 8192, %s45_s19, [#allocation7], %s1543_s0, %s1543_s0, %s1544_s21  }
  0x34   :  { %1532 = dma.done.wait [#allocation4], 512  }
  0x35   :  { %1533 = vsyncadd [#allocation4], 4294966784 }
  0x36   :  { %1534 = dma.done.wait [#allocation7], 16384  }
  0x37   :  { %1535 = vsyncadd [#allocation7], 4294950912  ;;  %v1252_v0 = vld [vmem:[#allocation6 + $0x4] ss:$16 sps:$4 sm:$0xff]   ;;  %v1254_v1 = vld [vmem:[#allocation6] ss:$16 sps:$4 sm:$0xff]  }
  0x38   :  { %486 = vmatprep.subr.bf16.mxu1 %v1252_v0  ;;  %v1255_v2 = vld [vmem:[#allocation6 + $0x24] ss:$16 sps:$4 sm:$0xff]   ;;  %v1257_v3 = vld [vmem:[#allocation6 + $0x20] ss:$16 sps:$4 sm:$0xff]   ;;  %v71_v13 = vld [vmem:[#allocation3 + $0x8] sm:$0xff]  ;;  %s1545_s10 = smov [#allocation9]  }
  0x39   :  { %487 = vmatpush1.bf16.msra.mxu1 %v1254_v1  ;;  %v1258_v4 = vld [vmem:[#allocation6 + $0x44] ss:$16 sps:$4 sm:$0xff]   ;;  %v1260_v5 = vld [vmem:[#allocation6 + $0x40] ss:$16 sps:$4 sm:$0xff]   ;;  %v73_v14 = vld [vmem:[#allocation3 + $0x18] sm:$0xff]  ;;  %s1098_s11 = sshll.u32 %s1545_s10, 4  ;;  %s1099_s11 = int_to_ptr.vmem [resolvable:$true] %s1098_s11 }
  0x3a   :  { %488 = vmatprep.subr.bf16.mxu1 %v1255_v2  ;;  %v1261_v6 = vld [vmem:[#allocation6 + $0x64] ss:$16 sps:$4 sm:$0xff]   ;;  %v1263_v7 = vld [vmem:[#allocation6 + $0x60] ss:$16 sps:$4 sm:$0xff]   ;;  %v1625_v15 = vpack.c.bf16 %v73_v14, %v71_v13  ;;  %v1302_v46 = vld [vmem:[#allocation6 + $0xc] ss:$16 sps:$4 sm:$0xff]   ;;  %p1515_p11 = scmp.lt.s32.totalorder %s1099_s11, %s1099_s11 }
  0x3b   :  { %v1264_v8 = vld [vmem:[#allocation6 + $0x84] ss:$16 sps:$4 sm:$0xff]   ;;  %v1266_v9 = vld [vmem:[#allocation6 + $0x80] ss:$16 sps:$4 sm:$0xff]   ;;  %v1300_v49 = vld [vmem:[#allocation6 + $0x8] ss:$16 sps:$4 sm:$0xff]  }
  0x3c   :  { %v1267_v10 = vld [vmem:[#allocation6 + $0xa4] ss:$16 sps:$4 sm:$0xff]   ;;  %v1269_v11 = vld [vmem:[#allocation6 + $0xa0] ss:$16 sps:$4 sm:$0xff]   ;;  %518 = vmatprep.mubr.bf16.mxu1 %v1625_v15  ;;  %v1305_v51 = vld [vmem:[#allocation6 + $0x2c] ss:$16 sps:$4 sm:$0xff]  }
  0x3d   :  { %489 = vmatpush1.bf16.msra.mxu1 %v1257_v3  ;;  %v1270_v12 = vld [vmem:[#allocation6 + $0xc4] ss:$16 sps:$4 sm:$0xff]   ;;  %v1272_v16 = vld [vmem:[#allocation6 + $0xc0] ss:$16 sps:$4 sm:$0xff]   ;;  %v1303_v54 = vld [vmem:[#allocation6 + $0x28] ss:$16 sps:$4 sm:$0xff]  }
  0x3e   :  { %490 = vmatprep.subr.bf16.mxu1 %v1258_v4  ;;  %v1273_v17 = vld [vmem:[#allocation6 + $0xe4] ss:$16 sps:$4 sm:$0xff]   ;;  %v1275_v18 = vld [vmem:[#allocation6 + $0xe0] ss:$16 sps:$4 sm:$0xff]   ;;  %v1308_v55 = vld [vmem:[#allocation6 + $0x4c] ss:$16 sps:$4 sm:$0xff]  }
  0x3f   :  { %v1276_v19 = vld [vmem:[#allocation6 + $0x104] ss:$16 sps:$4 sm:$0xff]   ;;  %v1278_v20 = vld [vmem:[#allocation6 + $0x100] ss:$16 sps:$4 sm:$0xff]   ;;  %v1306_v58 = vld [vmem:[#allocation6 + $0x48] ss:$16 sps:$4 sm:$0xff]  }
  0x40   :  { %v1279_v21 = vld [vmem:[#allocation6 + $0x124] ss:$16 sps:$4 sm:$0xff]   ;;  %v1281_v22 = vld [vmem:[#allocation6 + $0x120] ss:$16 sps:$4 sm:$0xff]   ;;  %v1311_v59 = vld [vmem:[#allocation6 + $0x6c] ss:$16 sps:$4 sm:$0xff]  }
  0x41   :  { %491 = vmatpush1.bf16.msra.mxu1 %v1260_v5  ;;  %v1282_v23 = vld [vmem:[#allocation6 + $0x144] ss:$16 sps:$4 sm:$0xff]   ;;  %v1284_v24 = vld [vmem:[#allocation6 + $0x140] ss:$16 sps:$4 sm:$0xff]   ;;  %v1309_v62 = vld [vmem:[#allocation6 + $0x68] ss:$16 sps:$4 sm:$0xff]  }
  0x42   :  { %492 = vmatprep.subr.bf16.mxu1 %v1261_v6  ;;  %v1285_v25 = vld [vmem:[#allocation6 + $0x164] ss:$16 sps:$4 sm:$0xff]   ;;  %v1287_v26 = vld [vmem:[#allocation6 + $0x160] ss:$16 sps:$4 sm:$0xff]   ;;  %v1314_v63 = vld [vmem:[#allocation6 + $0x8c] ss:$16 sps:$4 sm:$0xff]  }
  0x43   :  { %v1288_v27 = vld [vmem:[#allocation6 + $0x184] ss:$16 sps:$4 sm:$0xff]   ;;  %v1350_v29 = vld [vmem:[#allocation8] ss:$8 sps:$4 sm:$0xff]   ;;  %v1353_v33 = vld [vmem:[#allocation8 + $0x10] ss:$8 sps:$4 sm:$0xff]  }
  0x44   :  { %v1348_v28 = vld [vmem:[#allocation8 + $0x4] ss:$8 sps:$4 sm:$0xff]   ;;  %v1290_v30 = vld [vmem:[#allocation6 + $0x180] ss:$16 sps:$4 sm:$0xff]   ;;  %v1351_v31 = vld [vmem:[#allocation8 + $0x14] ss:$8 sps:$4 sm:$0xff]  }
  0x45   :  { %493 = vmatpush1.bf16.msra.mxu1 %v1263_v7  ;;  %972 = vmatprep.subr.bf16.mxu0 %v1348_v28  ;;  %v1291_v32 = vld [vmem:[#allocation6 + $0x1a4] ss:$16 sps:$4 sm:$0xff]   ;;  %v1293_v35 = vld [vmem:[#allocation6 + $0x1a0] ss:$16 sps:$4 sm:$0xff]   ;;  %v1312_v2 = vld [vmem:[#allocation6 + $0x88] ss:$16 sps:$4 sm:$0xff]  }
  0x46   :  { %494 = vmatprep.subr.bf16.mxu1 %v1264_v8  ;;  %973 = vmatpush1.bf16.msra.mxu0 %v1350_v29  ;;  %v1354_v34 = vld [vmem:[#allocation8 + $0x24] ss:$8 sps:$4 sm:$0xff]   ;;  %v1356_v37 = vld [vmem:[#allocation8 + $0x20] ss:$8 sps:$4 sm:$0xff]   ;;  %v1357_v38 = vld [vmem:[#allocation8 + $0x34] ss:$8 sps:$4 sm:$0xff]  }
  0x47   :  { %974 = vmatprep.subr.bf16.mxu0 %v1351_v31  ;;  %v1294_v36 = vld [vmem:[#allocation6 + $0x1c4] ss:$16 sps:$4 sm:$0xff]   ;;  %v1296_v39 = vld [vmem:[#allocation6 + $0x1c0] ss:$16 sps:$4 sm:$0xff]   ;;  %v1317_v3 = vld [vmem:[#allocation6 + $0xac] ss:$16 sps:$4 sm:$0xff]  }
  0x48   :  { %v1297_v40 = vld [vmem:[#allocation6 + $0x1e4] ss:$16 sps:$4 sm:$0xff]   ;;  %v1359_v41 = vld [vmem:[#allocation8 + $0x30] ss:$8 sps:$4 sm:$0xff]   ;;  %v1362_v47 = vld [vmem:[#allocation8 + $0x40] ss:$8 sps:$4 sm:$0xff]  }
  0x49   :  { %495 = vmatpush1.bf16.msra.mxu1 %v1266_v9  ;;  %v1360_v42 = vld [vmem:[#allocation8 + $0x44] ss:$8 sps:$4 sm:$0xff]   ;;  %v1299_v43 = vld [vmem:[#allocation6 + $0x1e0] ss:$16 sps:$4 sm:$0xff]   ;;  %v1363_v48 = vld [vmem:[#allocation8 + $0x54] ss:$8 sps:$4 sm:$0xff]  }
  0x4a   :  { %496 = vmatprep.subr.bf16.mxu1 %v1267_v10  ;;  %975 = vmatpush1.bf16.msra.mxu0 %v1353_v33  ;;  %v70_v44 = vld [vmem:[#allocation3] sm:$0xff]  ;;  %v72_v45 = vld [vmem:[#allocation3 + $0x10] sm:$0xff]  ;;  %v1315_v6 = vld [vmem:[#allocation6 + $0xa8] ss:$16 sps:$4 sm:$0xff]  }
  0x4b   :  { %976 = vmatprep.subr.bf16.mxu0 %v1354_v34  ;;  %v1628_v50 = vpack.c.bf16 %v72_v45, %v70_v44  ;;  %v1365_v52 = vld [vmem:[#allocation8 + $0x50] ss:$8 sps:$4 sm:$0xff]   ;;  %v1366_v53 = vld [vmem:[#allocation8 + $0x64] ss:$8 sps:$4 sm:$0xff]   ;;  %v1368_v56 = vld [vmem:[#allocation8 + $0x60] ss:$8 sps:$4 sm:$0xff]  }
  0x4c   :  { %v1369_v57 = vld [vmem:[#allocation8 + $0x74] ss:$8 sps:$4 sm:$0xff]   ;;  %v1371_v60 = vld [vmem:[#allocation8 + $0x70] ss:$8 sps:$4 sm:$0xff]   ;;  %v1372_v61 = vld [vmem:[#allocation8 + $0x84] ss:$8 sps:$4 sm:$0xff]  }
  0x4d   :  { %497 = vmatpush1.bf16.msra.mxu1 %v1269_v11  ;;  %v1374_v0 = vld [vmem:[#allocation8 + $0x80] ss:$8 sps:$4 sm:$0xff]   ;;  %v1375_v1 = vld [vmem:[#allocation8 + $0x94] ss:$8 sps:$4 sm:$0xff]   ;;  %v1377_v4 = vld [vmem:[#allocation8 + $0x90] ss:$8 sps:$4 sm:$0xff]  }
  0x4e   :  { %498 = vmatprep.subr.bf16.mxu1 %v1270_v12  ;;  %977 = vmatpush1.bf16.msra.mxu0 %v1356_v37  ;;  %v1378_v5 = vld [vmem:[#allocation8 + $0xa4] ss:$8 sps:$4 sm:$0xff]   ;;  %v1380_v8 = vld [vmem:[#allocation8 + $0xa0] ss:$8 sps:$4 sm:$0xff]   ;;  %v1381_v9 = vld [vmem:[#allocation8 + $0xb4] ss:$8 sps:$4 sm:$0xff]  }
  0x4f   :  { %978 = vmatprep.subr.bf16.mxu0 %v1357_v38  ;;  %v1320_v7 = vld [vmem:[#allocation6 + $0xcc] ss:$16 sps:$4 sm:$0xff]   ;;  %v1318_v10 = vld [vmem:[#allocation6 + $0xc8] ss:$16 sps:$4 sm:$0xff]  }
  0x50   :  { %v1323_v11 = vld [vmem:[#allocation6 + $0xec] ss:$16 sps:$4 sm:$0xff]   ;;  %v1383_v12 = vld [vmem:[#allocation8 + $0xb0] ss:$8 sps:$4 sm:$0xff]  }
  0x51   :  { %499 = vmatpush1.bf16.msra.mxu1 %v1272_v16  ;;  %v1384_v13 = vld [vmem:[#allocation8 + $0xc4] ss:$8 sps:$4 sm:$0xff]   ;;  %v1321_v14 = vld [vmem:[#allocation6 + $0xe8] ss:$16 sps:$4 sm:$0xff]  }
  0x52   :  { %500 = vmatprep.subr.bf16.mxu1 %v1273_v17  ;;  %979 = vmatpush1.bf16.msra.mxu0 %v1359_v41  ;;  %v1386_v16 = vld [vmem:[#allocation8 + $0xc0] ss:$8 sps:$4 sm:$0xff]   ;;  %v1387_v17 = vld [vmem:[#allocation8 + $0xd4] ss:$8 sps:$4 sm:$0xff]   ;;  %v1389_v33 = vld [vmem:[#allocation8 + $0xd0] ss:$8 sps:$4 sm:$0xff]  }
  0x53   :  { %980 = vmatprep.subr.bf16.mxu0 %v1360_v42  ;;  %v1339_v28 = vld [vmem:[#allocation6 + $0x1a8] ss:$16 sps:$4 sm:$0xff]   ;;  %v1344_v29 = vld [vmem:[#allocation6 + $0x1cc] ss:$16 sps:$4 sm:$0xff]   ;;  %v1639_v42 = vld [vmem:[%s1676_s2] sm:$0xf] }
  0x54   :  { %v1347_v31 = vld [vmem:[#allocation6 + $0x1ec] ss:$16 sps:$4 sm:$0xff]   ;;  %v1395_v37 = vld [vmem:[#allocation8 + $0xf0] ss:$8 sps:$4 sm:$0xff]  }
  0x55   :  { %501 = vmatpush1.bf16.msra.mxu1 %v1275_v18  ;;  %v1324_v18 = vld [vmem:[#allocation6 + $0x108] ss:$16 sps:$4 sm:$0xff]   ;;  %v1390_v34 = vld [vmem:[#allocation8 + $0xe4] ss:$8 sps:$4 sm:$0xff]  }
  0x56   :  { %502 = vmatprep.subr.bf16.mxu1 %v1276_v19  ;;  %981 = vmatpush1.bf16.msra.mxu0 %v1362_v47  ;;  %v1329_v19 = vld [vmem:[#allocation6 + $0x12c] ss:$16 sps:$4 sm:$0xff]  }
  0x57   :  { %982 = vmatprep.subr.bf16.mxu0 %v1363_v48  ;;  %v1398_v38 = vld [vmem:[#allocation8 + $0x104] ss:$8 sps:$4 sm:$0xff]  }
  0x59   :  { %503 = vmatpush1.bf16.msra.mxu1 %v1278_v20  ;;  %v1327_v20 = vld [vmem:[#allocation6 + $0x128] ss:$16 sps:$4 sm:$0xff]  }
  0x5a   :  { %504 = vmatprep.subr.bf16.mxu1 %v1279_v21  ;;  %983 = vmatpush1.bf16.msra.mxu0 %v1365_v52  ;;  %v1332_v21 = vld [vmem:[#allocation6 + $0x14c] ss:$16 sps:$4 sm:$0xff]  }
  0x5b   :  { %984 = vmatprep.subr.bf16.mxu0 %v1366_v53 }
  0x5d   :  { %505 = vmatpush1.bf16.msra.mxu1 %v1281_v22  ;;  %v1330_v22 = vld [vmem:[#allocation6 + $0x148] ss:$16 sps:$4 sm:$0xff]  }
  0x5e   :  { %506 = vmatprep.subr.bf16.mxu1 %v1282_v23  ;;  %985 = vmatpush1.bf16.msra.mxu0 %v1368_v56  ;;  %v1335_v23 = vld [vmem:[#allocation6 + $0x16c] ss:$16 sps:$4 sm:$0xff]  }
  0x5f   :  { %986 = vmatprep.subr.bf16.mxu0 %v1369_v57 }
  0x61   :  { %507 = vmatpush1.bf16.msra.mxu1 %v1284_v24  ;;  %v1333_v24 = vld [vmem:[#allocation6 + $0x168] ss:$16 sps:$4 sm:$0xff]  }
  0x62   :  { %508 = vmatprep.subr.bf16.mxu1 %v1285_v25  ;;  %987 = vmatpush1.bf16.msra.mxu0 %v1371_v60  ;;  %v1338_v25 = vld [vmem:[#allocation6 + $0x18c] ss:$16 sps:$4 sm:$0xff]   ;;  %v1396_v60 = vld [vmem:[#allocation8 + $0x100] ss:$8 sps:$4 sm:$0xff]  }
  0x63   :  { %988 = vmatprep.subr.bf16.mxu0 %v1372_v61  ;;  %v1401_v61 = vld [vmem:[#allocation8 + $0x114] ss:$8 sps:$4 sm:$0xff]  }
  0x65   :  { %509 = vmatpush1.bf16.msra.mxu1 %v1287_v26  ;;  %v1336_v26 = vld [vmem:[#allocation6 + $0x188] ss:$16 sps:$4 sm:$0xff]  }
  0x66   :  { %510 = vmatprep.subr.bf16.mxu1 %v1288_v27  ;;  %989 = vmatpush1.bf16.msra.mxu0 %v1374_v0  ;;  %v1341_v27 = vld [vmem:[#allocation6 + $0x1ac] ss:$16 sps:$4 sm:$0xff]   ;;  %v1402_v0 = vld [vmem:[#allocation8 + $0x120] ss:$8 sps:$4 sm:$0xff]  }
  0x67   :  { %990 = vmatprep.subr.bf16.mxu0 %v1375_v1  ;;  %v1407_v1 = vld [vmem:[#allocation8 + $0x134] ss:$8 sps:$4 sm:$0xff]  }
  0x69   :  { %511 = vmatpush1.bf16.msra.mxu1 %v1290_v30  ;;  %v1342_v30 = vld [vmem:[#allocation6 + $0x1c8] ss:$16 sps:$4 sm:$0xff]  }
  0x6a   :  { %512 = vmatprep.subr.bf16.mxu1 %v1291_v32  ;;  %991 = vmatpush1.bf16.msra.mxu0 %v1377_v4  ;;  %v1345_v32 = vld [vmem:[#allocation6 + $0x1e8] ss:$16 sps:$4 sm:$0xff]  }
  0x6b   :  { %992 = vmatprep.subr.bf16.mxu0 %v1378_v5  ;;  %v1408_v4 = vld [vmem:[#allocation8 + $0x140] ss:$8 sps:$4 sm:$0xff]   ;;  %v1413_v5 = vld [vmem:[#allocation8 + $0x154] ss:$8 sps:$4 sm:$0xff]  }
  0x6d   :  { %513 = vmatpush1.bf16.msra.mxu1 %v1293_v35  ;;  %v1392_v35 = vld [vmem:[#allocation8 + $0xe0] ss:$8 sps:$4 sm:$0xff]  }
  0x6e   :  { %514 = vmatprep.subr.bf16.mxu1 %v1294_v36  ;;  %993 = vmatpush1.bf16.msra.mxu0 %v1380_v8  ;;  %v1393_v36 = vld [vmem:[#allocation8 + $0xf4] ss:$8 sps:$4 sm:$0xff]   ;;  %v1414_v8 = vld [vmem:[#allocation8 + $0x160] ss:$8 sps:$4 sm:$0xff]  }
  0x6f   :  { %994 = vmatprep.subr.bf16.mxu0 %v1381_v9  ;;  %v1419_v9 = vld [vmem:[#allocation8 + $0x174] ss:$8 sps:$4 sm:$0xff]  }
  0x71   :  { %515 = vmatpush1.bf16.msra.mxu1 %v1296_v39  ;;  %v146_v39 = vlaneseq }
  0x72   :  { %516 = vmatprep.subr.bf16.mxu1 %v1297_v40  ;;  %995 = vmatpush1.bf16.msra.mxu0 %v1383_v12  ;;  %v1420_v12 = vld [vmem:[#allocation8 + $0x180] ss:$8 sps:$4 sm:$0xff]  }
  0x73   :  { %996 = vmatprep.subr.bf16.mxu0 %v1384_v13  ;;  %v1633_v40 = vshrl.u32 %v146_v39, 7  ;;  %v1425_v13 = vld [vmem:[#allocation8 + $0x194] ss:$8 sps:$4 sm:$0xff]  }
  0x75   :  { %517 = vmatpush1.bf16.msra.mxu1 %v1299_v43  ;;  %v148_v41 = vsub.s32 0, %v1633_v40  ;;  %v152_v43 = vsub.s32 1, %v1633_v40 }
  0x76   :  { %529 = vmatprep.subr.bf16.mxu1 %v1302_v46  ;;  %997 = vmatpush1.bf16.msra.mxu0 %v1386_v16  ;;  %v1426_v16 = vld [vmem:[#allocation8 + $0x1a0] ss:$8 sps:$4 sm:$0xff]  }
  0x77   :  { %998 = vmatprep.subr.bf16.mxu0 %v1387_v17  ;;  %v149_v44 = vrot.slane %v1639_v42, %v148_v41  ;;  %v153_v45 = vrot.slane %v1639_v42, %v152_v43  ;;  %v1431_v17 = vld [vmem:[#allocation8 + $0x1b4] ss:$8 sps:$4 sm:$0xff]  }
  0x78   :  { %519 = vmatmul.mubr.bf16.vlgmr.msra.gmra.mrb[0].mxu1 %v1628_v50 }
  0x79   :  { %530 = vmatpush1.bf16.msra.mxu1 %v1300_v49  ;;  %561 = vmatprep.mubr.bf16.mxu1 %v1625_v15  ;;  %v1326_v15 = vld [vmem:[#allocation6 + $0x10c] ss:$16 sps:$4 sm:$0xff]  }
  0x7a   :  { %531 = vmatprep.subr.bf16.mxu1 %v1305_v51  ;;  %999 = vmatpush1.bf16.msra.mxu0 %v1389_v33 }
  0x7b   :  { %1000 = vmatprep.subr.bf16.mxu0 %v1390_v34 }
  0x7d   :  { %532 = vmatpush1.bf16.msra.mxu1 %v1303_v54 }
  0x7e   :  { %533 = vmatprep.subr.bf16.mxu1 %v1308_v55  ;;  %1001 = vmatpush1.bf16.msra.mxu0 %v1392_v35 }
  0x7f   :  { %1002 = vmatprep.subr.bf16.mxu0 %v1393_v36 }
  0x81   :  { %534 = vmatpush1.bf16.msra.mxu1 %v1306_v58 }
  0x82   :  { %535 = vmatprep.subr.bf16.mxu1 %v1311_v59  ;;  %1003 = vmatpush1.bf16.msra.mxu0 %v1395_v37 }
  0x83   :  { %1015 = vmatprep.subr.bf16.mxu0 %v1398_v38  ;;  %v1441_v38 = vld [vmem:[#allocation8 + $0x1f0] ss:$8 sps:$4 sm:$0xff]  }
  0x85   :  { %536 = vmatpush1.bf16.msra.mxu1 %v1309_v62  ;;  %v1399_v62 = vld [vmem:[#allocation8 + $0x110] ss:$8 sps:$4 sm:$0xff]  }
  0x86   :  { %537 = vmatprep.subr.bf16.mxu1 %v1314_v63  ;;  %v1404_v63 = vld [vmem:[#allocation8 + $0x124] ss:$8 sps:$4 sm:$0xff]  }
  0x89   :  { %538 = vmatpush1.bf16.msra.mxu1 %v1312_v2  ;;  %v1405_v2 = vld [vmem:[#allocation8 + $0x130] ss:$8 sps:$4 sm:$0xff]  }
  0x8a   :  { %539 = vmatprep.subr.bf16.mxu1 %v1317_v3  ;;  %v1410_v3 = vld [vmem:[#allocation8 + $0x144] ss:$8 sps:$4 sm:$0xff]  }
  0x8d   :  { %540 = vmatpush1.bf16.msra.mxu1 %v1315_v6  ;;  %v1411_v6 = vld [vmem:[#allocation8 + $0x150] ss:$8 sps:$4 sm:$0xff]  }
  0x8e   :  { %541 = vmatprep.subr.bf16.mxu1 %v1320_v7  ;;  %v1416_v7 = vld [vmem:[#allocation8 + $0x164] ss:$8 sps:$4 sm:$0xff]  }
  0x91   :  { %542 = vmatpush1.bf16.msra.mxu1 %v1318_v10  ;;  %v1417_v10 = vld [vmem:[#allocation8 + $0x170] ss:$8 sps:$4 sm:$0xff]  }
  0x92   :  { %543 = vmatprep.subr.bf16.mxu1 %v1323_v11  ;;  %v1422_v11 = vld [vmem:[#allocation8 + $0x184] ss:$8 sps:$4 sm:$0xff]  }
  0x95   :  { %544 = vmatpush1.bf16.msra.mxu1 %v1321_v14  ;;  %v1423_v14 = vld [vmem:[#allocation8 + $0x190] ss:$8 sps:$4 sm:$0xff]  }
  0x96   :  { %545 = vmatprep.subr.bf16.mxu1 %v1326_v15  ;;  %v1428_v15 = vld [vmem:[#allocation8 + $0x1a4] ss:$8 sps:$4 sm:$0xff]  }
  0x99   :  { %546 = vmatpush1.bf16.msra.mxu1 %v1324_v18  ;;  %v1429_v18 = vld [vmem:[#allocation8 + $0x1b0] ss:$8 sps:$4 sm:$0xff]  }
  0x9a   :  { %547 = vmatprep.subr.bf16.mxu1 %v1329_v19  ;;  %v1434_v19 = vld [vmem:[#allocation8 + $0x1c4] ss:$8 sps:$4 sm:$0xff]  }
  0x9d   :  { %548 = vmatpush1.bf16.msra.mxu1 %v1327_v20  ;;  %v1432_v20 = vld [vmem:[#allocation8 + $0x1c0] ss:$8 sps:$4 sm:$0xff]  }
  0x9e   :  { %549 = vmatprep.subr.bf16.mxu1 %v1332_v21  ;;  %v1437_v21 = vld [vmem:[#allocation8 + $0x1d4] ss:$8 sps:$4 sm:$0xff]  }
  0xa1   :  { %550 = vmatpush1.bf16.msra.mxu1 %v1330_v22  ;;  %v156_v22 = vsub.s32 2, %v1633_v40 }
  0xa2   :  { %551 = vmatprep.subr.bf16.mxu1 %v1335_v23  ;;  %v160_v23 = vsub.s32 3, %v1633_v40 }
  0xa5   :  { %552 = vmatpush1.bf16.msra.mxu1 %v1333_v24  ;;  %v1435_v24 = vld [vmem:[#allocation8 + $0x1d0] ss:$8 sps:$4 sm:$0xff]  }
  0xa6   :  { %553 = vmatprep.subr.bf16.mxu1 %v1338_v25  ;;  %v157_v25 = vrot.slane %v1639_v42, %v156_v22 }
  0xa9   :  { %554 = vmatpush1.bf16.msra.mxu1 %v1336_v26  ;;  %v1440_v26 = vld [vmem:[#allocation8 + $0x1e4] ss:$8 sps:$4 sm:$0xff]  }
  0xaa   :  { %555 = vmatprep.subr.bf16.mxu1 %v1341_v27  ;;  %v161_v27 = vrot.slane %v1639_v42, %v160_v23 }
  0xad   :  { %556 = vmatpush1.bf16.msra.mxu1 %v1339_v28 }
  0xae   :  { %557 = vmatprep.subr.bf16.mxu1 %v1344_v29  ;;  %v1438_v29 = vld [vmem:[#allocation8 + $0x1e0] ss:$8 sps:$4 sm:$0xff]  }
  0xb1   :  { %558 = vmatpush1.bf16.msra.mxu1 %v1342_v30 }
  0xb2   :  { %559 = vmatprep.subr.bf16.mxu1 %v1347_v31 }
  0xb5   :  { %560 = vmatpush1.bf16.msra.mxu1 %v1345_v32  ;;  %v1443_v32 = vld [vmem:[#allocation8 + $0x1f4] ss:$8 sps:$4 sm:$0xff]  }
  0xb8   :  { %562 = vmatmul.mubr.bf16.vlgmr.msra.gmra.mrb[4].mxu1 %v1628_v50 }
 0x14b   :  { %v520_v46 = vpop.f32.mrb[0].mxu1 }
 0x14c   :  { %v521_v47 = vadd.f32 %v520_v46, %v149_v44  ;;  %v522_v48 = vpop.f32.mrb[1].mxu1 }
 0x14d   :  { %v523_v49 = vadd.f32 %v522_v48, %v153_v45  ;;  %v524_v50 = vpop.f32.mrb[2].mxu1  ;;  %v1073_v48 = vld [vmem:[%s1678_s4] sm:$0x3]  ;;  %s1510_s4 = scalar_lea.vmem %s1099_s11, 512 }
 0x14e   :  { %v572_v51 = vmax.f32 %v521_v47, 0.0  ;;  %v525_v52 = vadd.f32 %v524_v50, %v149_v44  ;;  %v526_v53 = vpop.f32.mrb[3].mxu1  ;;  %v1082_v50 = vrot.slane %v1073_v48, %v152_v43  ;;  %p1511_p10 = scmp.ne.s32.totalorder %s1099_s11, %s1510_s4  ;;  %p1516_p12 = scmp.lt.s32.totalorder %s1510_s4, %s1510_s4 }
 0x14f   :  { %v527_v54 = vadd.f32 %v526_v53, %v153_v45  ;;  %v573_v56 = vmax.f32 %v523_v49, 0.0  ;;  %v1078_v49 = vrot.slane %v1073_v48, %v148_v41 }
 0x150   :  { %v576_v55 = vmax.f32 %v525_v52, 0.0  ;;  %p1517_p13 = por %p1516_p12, %p1515_p11 }
 0x151   :  { %v577_v57 = vmax.f32 %v527_v54, 0.0 }
 0x152   :  { %v584_v58 = vpack.c.bf16 %v576_v55, %v572_v51  ;;  %p1518_p0 = pnand %p1517_p13, %p1511_p10 }
 0x153   :  { %v585_v59 = vpack.c.bf16 %v577_v57, %v573_v56 }
 0x155   :  { %1004 = vmatprep.mubr.bf16.mxu0 %v585_v59 }
 0x156   :  { %1005 = vmatmul.mubr.bf16.vlgmr.msra.gmra.mrb[0].mxu0 %v584_v58 }
 0x157   :  { %1016 = vmatpush1.bf16.msra.mxu0 %v1396_v60 }
 0x158   :  { %1017 = vmatprep.subr.bf16.mxu0 %v1401_v61 }
 0x15b   :  { %1018 = vmatpush1.bf16.msra.mxu0 %v1399_v62 }
 0x15c   :  { %1019 = vmatprep.subr.bf16.mxu0 %v1404_v63 }
 0x15f   :  { %1020 = vmatpush1.bf16.msra.mxu0 %v1402_v0 }
 0x160   :  { %1021 = vmatprep.subr.bf16.mxu0 %v1407_v1 }
 0x163   :  { %1022 = vmatpush1.bf16.msra.mxu0 %v1405_v2 }
 0x164   :  { %1023 = vmatprep.subr.bf16.mxu0 %v1410_v3 }
 0x167   :  { %1024 = vmatpush1.bf16.msra.mxu0 %v1408_v4 }
 0x168   :  { %1025 = vmatprep.subr.bf16.mxu0 %v1413_v5 }
 0x16b   :  { %1026 = vmatpush1.bf16.msra.mxu0 %v1411_v6 }
 0x16c   :  { %1027 = vmatprep.subr.bf16.mxu0 %v1416_v7 }
 0x16f   :  { %1028 = vmatpush1.bf16.msra.mxu0 %v1414_v8 }
 0x170   :  { %1029 = vmatprep.subr.bf16.mxu0 %v1419_v9 }
 0x173   :  { %1030 = vmatpush1.bf16.msra.mxu0 %v1417_v10 }
 0x174   :  { %1031 = vmatprep.subr.bf16.mxu0 %v1422_v11 }
 0x177   :  { %1032 = vmatpush1.bf16.msra.mxu0 %v1420_v12 }
 0x178   :  { %1033 = vmatprep.subr.bf16.mxu0 %v1425_v13 }
 0x17b   :  { %1034 = vmatpush1.bf16.msra.mxu0 %v1423_v14 }
 0x17c   :  { %1035 = vmatprep.subr.bf16.mxu0 %v1428_v15 }
 0x17f   :  { %1036 = vmatpush1.bf16.msra.mxu0 %v1426_v16 }
 0x180   :  { %1037 = vmatprep.subr.bf16.mxu0 %v1431_v17 }
 0x183   :  { %1038 = vmatpush1.bf16.msra.mxu0 %v1429_v18 }
 0x184   :  { %1039 = vmatprep.subr.bf16.mxu0 %v1434_v19 }
 0x187   :  { %1040 = vmatpush1.bf16.msra.mxu0 %v1432_v20 }
 0x188   :  { %1041 = vmatprep.subr.bf16.mxu0 %v1437_v21 }
 0x18b   :  { %v563_v28 = vpop.f32.mrb[4].mxu1  ;;  %1042 = vmatpush1.bf16.msra.mxu0 %v1435_v24 }
 0x18c   :  { %v564_v30 = vadd.f32 %v563_v28, %v157_v25  ;;  %v565_v31 = vpop.f32.mrb[5].mxu1  ;;  %1043 = vmatprep.subr.bf16.mxu0 %v1440_v26 }
 0x18d   :  { %v566_v33 = vadd.f32 %v565_v31, %v161_v27  ;;  %v567_v34 = vpop.f32.mrb[6].mxu1 }
 0x18e   :  { %v568_v35 = vadd.f32 %v567_v34, %v157_v25  ;;  %v569_v36 = vpop.f32.mrb[7].mxu1  ;;  %v574_v39 = vmax.f32 %v564_v30, 0.0 }
 0x18f   :  { %v570_v37 = vadd.f32 %v569_v36, %v161_v27  ;;  %1044 = vmatpush1.bf16.msra.mxu0 %v1438_v29  ;;  %v575_v45 = vmax.f32 %v566_v33, 0.0 }
 0x190   :  { %v578_v44 = vmax.f32 %v568_v35, 0.0  ;;  %1045 = vmatprep.subr.bf16.mxu0 %v1443_v32 }
 0x191   :  { %v579_v46 = vmax.f32 %v570_v37, 0.0 }
 0x192   :  { %v586_v42 = vpack.c.bf16 %v578_v44, %v574_v39 }
 0x193   :  { %v587_v47 = vpack.c.bf16 %v579_v46, %v575_v45  ;;  %1046 = vmatpush1.bf16.msra.mxu0 %v1441_v38 }
 0x195   :  { %1047 = vmatprep.mubr.bf16.mxu0 %v587_v47 }
 0x196   :  { %1048 = vmatmul.mubr.bf16.vlgmr.msra.gmra.mrb[0].mxu0 %v586_v42 }
 0x269   :  { %v1049_v51 = vpop.f32.mrb[0].mxu0 }
 0x26a   :  { %v1085_v52 = vadd.f32 %v1078_v49, %v1049_v51  ;;  %v1051_v53 = vpop.f32.mrb[1].mxu0 }
 0x26b   :  { %v1086_v54 = vadd.f32 %v1082_v50, %v1051_v53  ;;  %v1053_v55 = vpop.f32.mrb[2].mxu0 }
 0x26c   :  { %1089 = vst [vmem:[#allocation9] sm:$0xff] %v1085_v52  ;;  %v1087_v56 = vadd.f32 %v1078_v49, %v1053_v55  ;;  %v1055_v57 = vpop.f32.mrb[3].mxu0 }
 0x26d   :  { %1090 = vst [vmem:[#allocation9 + $0x8] sm:$0xff] %v1086_v54  ;;  %v1088_v58 = vadd.f32 %v1082_v50, %v1055_v57 }
 0x26e   :  { %1091 = vst [vmem:[#allocation9 + $0x10] sm:$0xff] %v1087_v56 }
 0x26f   :  { %1092 = vst [vmem:[#allocation9 + $0x18] sm:$0xff] %v1088_v58 }
 0x270   :  { %1521 = shalt.err (!%p1518_p0)
}
 0x271   :  { %s1522_s14 = scalar_lea.hbm %s1679_s5, 512 }
 0x272   :  { %p1523_p1 = scmp.ne.s32.totalorder %s1679_s5, %s1522_s14  ;;  %p1526_p2 = scmp.lt.u32.totalorder %s1522_s14, %s1679_s5 }
 0x274   :  { %p1528_p3 = pnand %p1526_p2, %p1523_p1 }
 0x276   :  { %1531 = shalt.err (!%p1528_p3)
}
 0x277   :  { %1104 = dma.vmem_to_hbm [thread:$0]  %s1099_s11, 512, %s1679_s5, [#allocation5], %s1540_s30, %s1540_s30, %s1541_s6  }
 0x278   :  { %1536 = dma.done.wait [#allocation5], 512  }
 0x279   :  { %1537 = vsyncadd [#allocation5], 4294966784 }
 0x27a   :  { %1108 = vsyncpa [#allocation4], 1 }
 0x27b   :  { %1109 = vsyncpa [#allocation7], 1 }
 0x27c   :  { %1110 = vsyncpa [#allocation5], 1 }

</bundles_post_ra>
